<compile_context>
chip_gen: v5e
topology: v5e:2x2
jax: 0.10.0
libtpu: 0.0.40
codegen_flags: <defaults>
</compile_context>

<pallas_src>
import functools

import jax
import jax.numpy as jnp
import numpy as np
from jax.experimental import pallas as pl
from jax.experimental.pallas import tpu as pltpu

_GT_PAD_SENTINEL = 1e8  # padded gt columns land far away -> never pollute row mins


def _round_up(x, m):
    return (x + m - 1) // m * m


# ----------------------------------------------------------------------------- #
# Fused chamfer + consistency kernel
# ----------------------------------------------------------------------------- #
def _fused_loss_kernel(sp_ref, gt_ref, aux_ref, out_ref, rowmin_ref, colsum_ref,
                       *, n_valid, tile_n, padded, use_mxu):
    """One (batch-block, N-tile) grid step.

    sp_ref:     (bb, M, 3)    structure points (or transformed structure points)
    gt_ref:     (bb, 3, TN)   one lane-dense tile of the gt cloud along N
    aux_ref:    (bb, M, 3)    consistency target (rotated + detached structure points)
    out_ref:    (bb, 1, 3)    per-batch [sum_i min_j d, sum_j min_i d, sse(sp,aux)]
    rowmin_ref: (bb, M, 128)  running lane-folded min_j d across N tiles
    colsum_ref: (bb, 1, 128)  running lane-folded sum_j min_i d
    """
    k = pl.program_id(1)
    nk = pl.num_programs(1)

    @pl.when(k == 0)
    def _init():
        rowmin_ref[...] = jnp.full_like(rowmin_ref, jnp.inf)
        colsum_ref[...] = jnp.zeros_like(colsum_ref)

    sp = sp_ref[...]     # (bb, M, 3)
    gt = gt_ref[...]     # (bb, 3, TN)

    if use_mxu:
        # d = |sp|^2 + |gt|^2 - 2<sp,gt>; only the cross term rides the MXU.
        sp_sq = jnp.sum(sp * sp, axis=2, keepdims=True)          # (bb, M, 1)
        gt_sq = jnp.sum(gt * gt, axis=1, keepdims=True)          # (bb, 1, TN)
        cross = jnp.einsum('bmk,bkn->bmn', sp * (-2.0), gt,
                           preferred_element_type=jnp.float32,
                           precision=jax.lax.Precision.HIGH)
        d = jnp.maximum(cross + sp_sq + gt_sq, 0.0)              # clamp cancellation
    else:
        # Small M: direct (sp - gt)^2 on the VPU; exact, no MXU push/drain cadence.
        d = None
        for c in range(3):
            diff = sp[:, :, c:c + 1] - gt[:, c:c + 1, :]         # (bb, M, TN)
            d = diff * diff if d is None else d + diff * diff

    # Running row-min: fold the TN lanes down to 128 with element-wise VALU mins;
    # padded gt columns carry a huge sentinel so no masking is needed here.
    part = d[:, :, 0:128]
    for c in range(1, tile_n // 128):
        part = jnp.minimum(part, d[:, :, c * 128:(c + 1) * 128])
    rowmin_ref[...] = jnp.minimum(rowmin_ref[...], part)

    # Column mins are exact per tile (M never tiled); fold-sum lanes down to 128.
    colmin = jnp.min(d, axis=1, keepdims=True)                   # (bb, 1, TN)

    def _accum_cols(cm):
        csum = cm[:, :, 0:128]
        for c in range(1, tile_n // 128):
            csum = csum + cm[:, :, c * 128:(c + 1) * 128]
        colsum_ref[...] = colsum_ref[...] + csum

    if padded:
        # Only the last N-tile contains padded columns; gate the (tiny) row mask.
        @pl.when(k == nk - 1)
        def _masked():
            col = jax.lax.broadcasted_iota(jnp.int32, (1, 1, tile_n), 2) + k * tile_n
            _accum_cols(jnp.where(col < n_valid, colmin, 0.0))

        @pl.when(k != nk - 1)
        def _unmasked():
            _accum_cols(colmin)
    else:
        _accum_cols(colmin)

    @pl.when(k == nk - 1)
    def _finalize():
        rm = jnp.min(rowmin_ref[...], axis=2, keepdims=True)             # (bb, M, 1)
        sum_sp = jnp.sum(rm, axis=1, keepdims=True)                      # (bb, 1, 1)
        sum_gt = jnp.sum(colsum_ref[...], axis=2, keepdims=True)         # (bb, 1, 1)
        dsa = sp - aux_ref[...]                                          # (bb, M, 3)
        sse = jnp.sum(jnp.sum(dsa * dsa, axis=2, keepdims=True),
                      axis=1, keepdims=True)                             # (bb, 1, 1)
        lane = jax.lax.broadcasted_iota(jnp.int32, (1, 1, 3), 2)
        out_ref[...] = jnp.where(lane == 0, sum_sp,                      # single store
                                 jnp.where(lane == 1, sum_gt, sse))


def _fused_structure_loss_sums(sp_all, gt_all, aux_all):
    """Per-batch [sum_i min_j d_ij, sum_j min_i d_ij, sse(sp, aux)] in one pallas_call.

    sp_all/aux_all: (BB, M, 3) float32 ; gt_all: (BB, N, 3) float32.
    """
    BB, M, _ = sp_all.shape
    N = gt_all.shape[1]

    sp_all = sp_all.astype(jnp.float32)
    aux_all = aux_all.astype(jnp.float32)
    # Lane-dense streamed operand: (BB, 3, N).
    gt_t = jnp.transpose(gt_all.astype(jnp.float32), (0, 2, 1))

    # N-tile: multiple of 128, <= 1024, shrunk for very large M so the (bb, M, TN)
    # f32 distance strip stays small enough for v7x's scoped VMEM.
    tile_n = min(1024, _round_up(N, 128))
    while tile_n > 128 and tile_n % 256 == 0 and M * tile_n * 4 > 4 * 1024 * 1024:
        tile_n //= 2
    n_pad = _round_up(N, tile_n)
    padded = n_pad != N
    if padded:
        gt_t = jnp.pad(gt_t, ((0, 0), (0, 0), (0, n_pad - N)),
                       constant_values=_GT_PAD_SENTINEL)

    # Pack batch rows per grid step (amortize ~0.35us/step), bounded by a ~2 MiB
    # distance-strip budget, and keep >=2 blocks on the parallel axis (v7x 2 TCs).
    bb = max(1, min(16, BB, (2 * 1024 * 1024) // (M * tile_n * 4)))
    bb = min(bb, max(1, -(-BB // 2)))
    bb_pad = _round_up(BB, bb)
    if bb_pad != BB:
        pad = ((0, bb_pad - BB), (0, 0), (0, 0))
        sp_all = jnp.pad(sp_all, pad)
        aux_all = jnp.pad(aux_all, pad)
        gt_t = jnp.pad(gt_t, pad)

    grid = (bb_pad // bb, n_pad // tile_n)   # (parallel batch blocks, N reduction)
    use_mxu = M >= 128

    kernel = functools.partial(_fused_loss_kernel, n_valid=N, tile_n=tile_n,
                               padded=padded, use_mxu=use_mxu)

    out = pl.pallas_call(
        kernel,
        out_shape=jax.ShapeDtypeStruct((bb_pad, 1, 3), jnp.float32),
        grid_spec=pltpu.PrefetchScalarGridSpec(
            num_scalar_prefetch=0,
            grid=grid,
            in_specs=[
                pl.BlockSpec((bb, M, 3), lambda b, k: (b, 0, 0)),        # resident
                pl.BlockSpec((bb, 3, tile_n), lambda b, k: (b, 0, k)),   # streamed
                pl.BlockSpec((bb, M, 3), lambda b, k: (b, 0, 0)),        # resident
            ],
            out_specs=pl.BlockSpec((bb, 1, 3), lambda b, k: (b, 0, 0)),
            scratch_shapes=[
                pltpu.VMEM((bb, M, 128), jnp.float32),   # lane-folded running row-min
                pltpu.VMEM((bb, 1, 128), jnp.float32),   # lane-folded running col-sum
            ],
        ),
        compiler_params=pltpu.CompilerParams(
            dimension_semantics=("parallel", "arbitrary"),
            vmem_limit_bytes=32 * 1024 * 1024,
        ),
    )(sp_all, gt_t, aux_all)

    out = out[:BB]
    return out[:, 0, 0], out[:, 0, 1], out[:, 0, 2]


# ----------------------------------------------------------------------------- #
# ComputeLoss3d.forward
# ----------------------------------------------------------------------------- #
def compute_loss3d(gt_points, structure_points,
                   transed_gt_points=None, transed_structure_points=None,
                   trans_rot_mats=None):
    """Mirror of ComputeLoss3d.forward.

    gt_points:                (B, N, 3)
    structure_points:         (B, M, 3)
    transed_gt_points:        (T, B, N, 3) or None
    transed_structure_points: (T, B, M, 3) or None
    trans_rot_mats:           (T, 3, 3)    -- stands in for trans_func_list
    Returns (loss, cd_loss, consistent_loss).
    """
    B, N, _ = gt_points.shape
    M = structure_points.shape[1]

    if transed_structure_points is None:
        sum_sp, sum_gt, _ = _fused_structure_loss_sums(
            structure_points, gt_points, structure_points)
        cd_loss = jnp.sum(sum_sp) / (B * M) + jnp.sum(sum_gt) / (B * N)
        return cd_loss, cd_loss, None

    T = transed_structure_points.shape[0]
    # trans_func_list[i](structure_points) -> structure_points @ R_i, detached.
    # TODO(synk): arbitrary Python transform callables cannot be traced into a
    # kernel; they are modeled as rotation matrices applied as glue here.
    sp_det = jax.lax.stop_gradient(structure_points)
    tmp_sp = jnp.einsum('bmd,tde->tbme', sp_det, trans_rot_mats)

    # One fused launch over [original ; all transformed] batches.
    sp_all = jnp.concatenate(
        [structure_points, transed_structure_points.reshape(T * B, M, 3)], axis=0)
    gt_all = jnp.concatenate(
        [gt_points, transed_gt_points.reshape(T * B, N, 3)], axis=0)
    aux_all = jnp.concatenate(                   # aux == sp for the first B rows -> sse = 0
        [structure_points, tmp_sp.reshape(T * B, M, 3)], axis=0)

    sum_sp, sum_gt, sse = _fused_structure_loss_sums(sp_all, gt_all, aux_all)

    cd0 = jnp.sum(sum_sp[:B]) / (B * M) + jnp.sum(sum_gt[:B]) / (B * N)
    cdt = jnp.sum(sum_sp[B:]) / (T * B * M) + jnp.sum(sum_gt[B:]) / (T * B * N)
    cd_loss = (cd0 + cdt) / (T + 1)
    # sum_i MSE_i / T * 1000  ==  total_sse / (T*B*M*3) * 1000
    consistent_loss = jnp.sum(sse[B:]) / (T * B * M * 3) * 1000.0
    loss = cd_loss + consistent_loss
    return loss, cd_loss, consistent_loss


# ----------------------------------------------------------------------------- #
# Pure-JAX reference (sanity check)
# ----------------------------------------------------------------------------- #
def _chamfer_ref(a, b):
    d = jnp.sum((a[:, :, None, :] - b[:, None, :, :]) ** 2, axis=-1)
    return jnp.mean(jnp.min(d, axis=2)) + jnp.mean(jnp.min(d, axis=1))


def _ref_loss(gt, sp, tgt, tsp, rots):
    T, B, M, _ = tsp.shape
    N = gt.shape[1]
    cd = _chamfer_ref(sp, gt) + _chamfer_ref(tsp.reshape(T * B, M, 3),
                                             tgt.reshape(T * B, N, 3))
    tmp = jnp.einsum('bmd,tde->tbme', sp, rots)
    cons = jnp.mean((tmp - tsp) ** 2) * 1000.0
    cd = cd / (T + 1)
    return cd + cons, cd, cons


# ----------------------------------------------------------------------------- #
if __name__ == "__main__":
    key = jax.random.PRNGKey(0)
    k1, k2, k3, k4, k5 = jax.random.split(key, 5)

    # ---- Test 1: full path (transforms + consistency), small M -> VPU distance path
    B, N, M, T = 3, 64, 16, 2
    gt_points = jax.random.normal(k1, (B, N, 3), jnp.float32)
    structure_points = jax.random.normal(k2, (B, M, 3), jnp.float32)

    def rot_z(a):
        c, s = np.cos(a), np.sin(a)
        return np.array([[c, -s, 0.0], [s, c, 0.0], [0.0, 0.0, 1.0]], np.float32)

    trans_rot_mats = jnp.asarray(np.stack([rot_z(0.3), rot_z(-0.7)]))  # (T, 3, 3)

    transed_gt_points = jnp.einsum('bnd,tde->tbne', gt_points, trans_rot_mats)
    transed_structure_points = (
        jnp.einsum('bmd,tde->tbme', structure_points, trans_rot_mats)
        + 0.01 * jax.random.normal(k3, (T, B, M, 3), jnp.float32)
    )

    loss, cd, cons = compute_loss3d(gt_points, structure_points,
                                    transed_gt_points, transed_structure_points,
                                    trans_rot_mats)
    jax.block_until_ready(loss)

    ref_loss, ref_cd, ref_cons = _ref_loss(gt_points, structure_points,
                                           transed_gt_points,
                                           transed_structure_points,
                                           trans_rot_mats)
    np.testing.assert_allclose(np.asarray(loss), np.asarray(ref_loss),
                               rtol=1e-4, atol=1e-4)
    np.testing.assert_allclose(np.asarray(cd), np.asarray(ref_cd),
                               rtol=1e-4, atol=1e-4)
    np.testing.assert_allclose(np.asarray(cons), np.asarray(ref_cons),
                               rtol=1e-4, atol=1e-4)

    # ---- Test 2: no-transform path, larger M/N -> MXU distance path + multi-tile N
    B2, N2, M2 = 2, 1224, 128
    gt2 = jax.random.normal(k4, (B2, N2, 3), jnp.float32)
    sp2 = jax.random.normal(k5, (B2, M2, 3), jnp.float32)
    loss2, cd2, cons2 = compute_loss3d(gt2, sp2)
    jax.block_until_ready(loss2)
    ref_cd2 = _chamfer_ref(sp2, gt2)
    np.testing.assert_allclose(np.asarray(cd2), np.asarray(ref_cd2),
                               rtol=1e-4, atol=1e-4)
    assert cons2 is None

    print("KERNEL_OK")
</pallas_src>

<mosaic_0001>
module attributes {stable_mosaic.version = 11 : i64} {
  func.func @_fused_loss_kernel(%arg0: i32, %arg1: i32, %arg2: memref<5x16x3xf32, #tpu.memory_space<vmem>>, %arg3: memref<5x3x128xf32, #tpu.memory_space<vmem>>, %arg4: memref<5x16x3xf32, #tpu.memory_space<vmem>>, %arg5: memref<5x1x3xf32, #tpu.memory_space<vmem>>, %arg6: memref<5x16x128xf32, #tpu.memory_space<vmem>>, %arg7: memref<5x1x128xf32, #tpu.memory_space<vmem>>) attributes {dimension_semantics = [#tpu.dimension_semantics<parallel>, #tpu.dimension_semantics<arbitrary>], iteration_bounds = array<i64: 2, 1>, scalar_prefetch = 0 : i64, scratch_operands = 2 : i64, tpu.core_type = #tpu.core_type<tc>, window_params = [{transform_indices = @transform_0, window_bounds = array<i64: 5, 16, 3>}, {transform_indices = @transform_1, window_bounds = array<i64: 5, 3, 128>}, {transform_indices = @transform_2, window_bounds = array<i64: 5, 16, 3>}, {transform_indices = @transform_3, window_bounds = array<i64: 5, 1, 3>}]} {
    %c0_i32 = arith.constant 0 : i32
    %0 = arith.cmpi eq, %arg1, %c0_i32 : i32
    %1 = arith.extui %0 : i1 to i32
    %c0_i32_0 = arith.constant 0 : i32
    %2 = arith.cmpi ne, %1, %c0_i32_0 : i32
    scf.if %2 {
      %cst_18 = arith.constant 0x7F800000 : f32
      %39 = vector.broadcast %cst_18 : f32 to vector<5x16x128xf32>
      %c0_19 = arith.constant 0 : index
      %c0_20 = arith.constant 0 : index
      %c0_21 = arith.constant 0 : index
      %40 = vector.load %arg6[%c0_19, %c0_20, %c0_21] : memref<5x16x128xf32, #tpu.memory_space<vmem>>, vector<5x16x128xf32>
      tpu.vector_store %arg6[%c0_19, %c0_20, %c0_21], %39 {strides = array<i32>} : memref<5x16x128xf32, #tpu.memory_space<vmem>>, vector<5x16x128xf32>,
      %cst_22 = arith.constant 0.000000e+00 : f32
      %41 = vector.broadcast %cst_22 : f32 to vector<5x1x128xf32>
      %c0_23 = arith.constant 0 : index
      %c0_24 = arith.constant 0 : index
      %c0_25 = arith.constant 0 : index
      %42 = vector.load %arg7[%c0_23, %c0_24, %c0_25] : memref<5x1x128xf32, #tpu.memory_space<vmem>>, vector<5x1x128xf32>
      tpu.vector_store %arg7[%c0_23, %c0_24, %c0_25], %41 {strides = array<i32>} : memref<5x1x128xf32, #tpu.memory_space<vmem>>, vector<5x1x128xf32>,
    } else {
    }
    %c0 = arith.constant 0 : index
    %c0_1 = arith.constant 0 : index
    %c0_2 = arith.constant 0 : index
    %3 = vector.load %arg2[%c0, %c0_1, %c0_2] : memref<5x16x3xf32, #tpu.memory_space<vmem>>, vector<5x16x3xf32>
    %c0_3 = arith.constant 0 : index
    %c0_4 = arith.constant 0 : index
    %c0_5 = arith.constant 0 : index
    %4 = vector.load %arg3[%c0_3, %c0_4, %c0_5] : memref<5x3x128xf32, #tpu.memory_space<vmem>>, vector<5x3x128xf32>
    %5 = vector.extract_strided_slice %3 {offsets = [0, 0, 0], sizes = [5, 16, 1], strides = [1, 1, 1]} : vector<5x16x3xf32> to vector<5x16x1xf32>
    %6 = vector.extract_strided_slice %4 {offsets = [0, 0, 0], sizes = [5, 1, 128], strides = [1, 1, 1]} : vector<5x3x128xf32> to vector<5x1x128xf32>
    %7 = vector.broadcast %5 : vector<5x16x1xf32> to vector<5x16x128xf32>
    %8 = vector.broadcast %6 : vector<5x1x128xf32> to vector<5x16x128xf32>
    %9 = arith.subf %7, %8 : vector<5x16x128xf32>
    %10 = arith.mulf %9, %9 : vector<5x16x128xf32>
    %11 = vector.extract_strided_slice %3 {offsets = [0, 0, 1], sizes = [5, 16, 1], strides = [1, 1, 1]} : vector<5x16x3xf32> to vector<5x16x1xf32>
    %12 = vector.extract_strided_slice %4 {offsets = [0, 1, 0], sizes = [5, 1, 128], strides = [1, 1, 1]} : vector<5x3x128xf32> to vector<5x1x128xf32>
    %13 = vector.broadcast %11 : vector<5x16x1xf32> to vector<5x16x128xf32>
    %14 = vector.broadcast %12 : vector<5x1x128xf32> to vector<5x16x128xf32>
    %15 = arith.subf %13, %14 : vector<5x16x128xf32>
    %16 = arith.mulf %15, %15 : vector<5x16x128xf32>
    %17 = arith.addf %10, %16 : vector<5x16x128xf32>
    %18 = vector.extract_strided_slice %3 {offsets = [0, 0, 2], sizes = [5, 16, 1], strides = [1, 1, 1]} : vector<5x16x3xf32> to vector<5x16x1xf32>
    %19 = vector.extract_strided_slice %4 {offsets = [0, 2, 0], sizes = [5, 1, 128], strides = [1, 1, 1]} : vector<5x3x128xf32> to vector<5x1x128xf32>
    %20 = vector.broadcast %18 : vector<5x16x1xf32> to vector<5x16x128xf32>
    %21 = vector.broadcast %19 : vector<5x1x128xf32> to vector<5x16x128xf32>
    %22 = arith.subf %20, %21 : vector<5x16x128xf32>
    %23 = arith.mulf %22, %22 : vector<5x16x128xf32>
    %24 = arith.addf %17, %23 : vector<5x16x128xf32>
    %c0_6 = arith.constant 0 : index
    %c0_7 = arith.constant 0 : index
    %c0_8 = arith.constant 0 : index
    %25 = vector.load %arg6[%c0_6, %c0_7, %c0_8] : memref<5x16x128xf32, #tpu.memory_space<vmem>>, vector<5x16x128xf32>
    %26 = arith.minimumf %25, %24 : vector<5x16x128xf32>
    %c0_9 = arith.constant 0 : index
    %c0_10 = arith.constant 0 : index
    %c0_11 = arith.constant 0 : index
    %27 = vector.load %arg6[%c0_9, %c0_10, %c0_11] : memref<5x16x128xf32, #tpu.memory_space<vmem>>, vector<5x16x128xf32>
    tpu.vector_store %arg6[%c0_9, %c0_10, %c0_11], %26 {strides = array<i32>} : memref<5x16x128xf32, #tpu.memory_space<vmem>>, vector<5x16x128xf32>,
    %cst = arith.constant dense<0x7F800000> : vector<5x128xf32>
    %28 = vector.multi_reduction <minimumf>, %24, %cst [1] : vector<5x16x128xf32> to vector<5x128xf32>
    %29 = vector.shape_cast %28 : vector<5x128xf32> to vector<5x1x128xf32>
    %c0_i32_12 = arith.constant 0 : i32
    %30 = arith.cmpi eq, %arg1, %c0_i32_12 : i32
    %31 = arith.extui %30 : i1 to i32
    %c0_i32_13 = arith.constant 0 : i32
    %32 = arith.cmpi ne, %31, %c0_i32_13 : i32
    scf.if %32 {
      %39 = tpu.iota {dimensions = array<i32: 2>} : vector<1x1x128xi32>
      %c128_i32 = arith.constant 128 : i32
      %40 = arith.muli %arg1, %c128_i32 : i32
      %41 = vector.broadcast %40 : i32 to vector<1x1x128xi32>
      %42 = arith.addi %39, %41 : vector<1x1x128xi32>
      %c64_i32 = arith.constant 64 : i32
      %43 = vector.broadcast %c64_i32 : i32 to vector<1x1x128xi32>
      %44 = arith.cmpi slt, %42, %43 : vector<1x1x128xi32>
      %cst_18 = arith.constant 0.000000e+00 : f32
      %45 = vector.shape_cast %44 : vector<1x1x128xi1> to vector<1x1x128xi1>
      %46 = vector.broadcast %45 : vector<1x1x128xi1> to vector<5x1x128xi1>
      %47 = vector.broadcast %cst_18 : f32 to vector<5x1x128xf32>
      %48 = arith.select %46, %29, %47 : vector<5x1x128xi1>, vector<5x1x128xf32>
      %c0_19 = arith.constant 0 : index
      %c0_20 = arith.constant 0 : index
      %c0_21 = arith.constant 0 : index
      %49 = vector.load %arg7[%c0_19, %c0_20, %c0_21] : memref<5x1x128xf32, #tpu.memory_space<vmem>>, vector<5x1x128xf32>
      %50 = arith.addf %49, %48 : vector<5x1x128xf32>
      %c0_22 = arith.constant 0 : index
      %c0_23 = arith.constant 0 : index
      %c0_24 = arith.constant 0 : index
      %51 = vector.load %arg7[%c0_22, %c0_23, %c0_24] : memref<5x1x128xf32, #tpu.memory_space<vmem>>, vector<5x1x128xf32>
      tpu.vector_store %arg7[%c0_22, %c0_23, %c0_24], %50 {strides = array<i32>} : memref<5x1x128xf32, #tpu.memory_space<vmem>>, vector<5x1x128xf32>,
    } else {
    }
    %c0_i32_14 = arith.constant 0 : i32
    %33 = arith.cmpi ne, %arg1, %c0_i32_14 : i32
    %34 = arith.extui %33 : i1 to i32
    %c0_i32_15 = arith.constant 0 : i32
    %35 = arith.cmpi ne, %34, %c0_i32_15 : i32
    scf.if %35 {
      %c0_18 = arith.constant 0 : index
      %c0_19 = arith.constant 0 : index
      %c0_20 = arith.constant 0 : index
      %39 = vector.load %arg7[%c0_18, %c0_19, %c0_20] : memref<5x1x128xf32, #tpu.memory_space<vmem>>, vector<5x1x128xf32>
      %40 = arith.addf %39, %29 : vector<5x1x128xf32>
      %c0_21 = arith.constant 0 : index
      %c0_22 = arith.constant 0 : index
      %c0_23 = arith.constant 0 : index
      %41 = vector.load %arg7[%c0_21, %c0_22, %c0_23] : memref<5x1x128xf32, #tpu.memory_space<vmem>>, vector<5x1x128xf32>
      tpu.vector_store %arg7[%c0_21, %c0_22, %c0_23], %40 {strides = array<i32>} : memref<5x1x128xf32, #tpu.memory_space<vmem>>, vector<5x1x128xf32>,
    } else {
    }
    %c0_i32_16 = arith.constant 0 : i32
    %36 = arith.cmpi eq, %arg1, %c0_i32_16 : i32
    %37 = arith.extui %36 : i1 to i32
    %c0_i32_17 = arith.constant 0 : i32
    %38 = arith.cmpi ne, %37, %c0_i32_17 : i32
    scf.if %38 {
      %c0_18 = arith.constant 0 : index
      %c0_19 = arith.constant 0 : index
      %c0_20 = arith.constant 0 : index
      %39 = vector.load %arg6[%c0_18, %c0_19, %c0_20] : memref<5x16x128xf32, #tpu.memory_space<vmem>>, vector<5x16x128xf32>
      %cst_21 = arith.constant dense<0x7F800000> : vector<5x16xf32>
      %40 = vector.multi_reduction <minimumf>, %39, %cst_21 [2] : vector<5x16x128xf32> to vector<5x16xf32>
      %41 = vector.shape_cast %40 : vector<5x16xf32> to vector<5x16x1xf32>
      %cst_22 = arith.constant dense<0.000000e+00> : vector<5x1xf32>
      %42 = vector.multi_reduction <add>, %41, %cst_22 [1] : vector<5x16x1xf32> to vector<5x1xf32>
      %43 = vector.shape_cast %42 : vector<5x1xf32> to vector<5x1x1xf32>
      %c0_23 = arith.constant 0 : index
      %c0_24 = arith.constant 0 : index
      %c0_25 = arith.constant 0 : index
      %44 = vector.load %arg7[%c0_23, %c0_24, %c0_25] : memref<5x1x128xf32, #tpu.memory_space<vmem>>, vector<5x1x128xf32>
      %cst_26 = arith.constant dense<0.000000e+00> : vector<5x1xf32>
      %45 = vector.multi_reduction <add>, %44, %cst_26 [2] : vector<5x1x128xf32> to vector<5x1xf32>
      %46 = vector.shape_cast %45 : vector<5x1xf32> to vector<5x1x1xf32>
      %c0_27 = arith.constant 0 : index
      %c0_28 = arith.constant 0 : index
      %c0_29 = arith.constant 0 : index
      %47 = vector.load %arg4[%c0_27, %c0_28, %c0_29] : memref<5x16x3xf32, #tpu.memory_space<vmem>>, vector<5x16x3xf32>
      %48 = arith.subf %3, %47 : vector<5x16x3xf32>
      %49 = arith.mulf %48, %48 : vector<5x16x3xf32>
      %cst_30 = arith.constant dense<0.000000e+00> : vector<5x16xf32>
      %50 = vector.multi_reduction <add>, %49, %cst_30 [2] : vector<5x16x3xf32> to vector<5x16xf32>
      %51 = vector.shape_cast %50 : vector<5x16xf32> to vector<5x16x1xf32>
      %cst_31 = arith.constant dense<0.000000e+00> : vector<5x1xf32>
      %52 = vector.multi_reduction <add>, %51, %cst_31 [1] : vector<5x16x1xf32> to vector<5x1xf32>
      %53 = vector.shape_cast %52 : vector<5x1xf32> to vector<5x1x1xf32>
      %54 = tpu.iota {dimensions = array<i32: 2>} : vector<1x1x3xi32>
      %c0_i32_32 = arith.constant 0 : i32
      %55 = vector.broadcast %c0_i32_32 : i32 to vector<1x1x3xi32>
      %56 = arith.cmpi eq, %54, %55 : vector<1x1x3xi32>
      %c1_i32 = arith.constant 1 : i32
      %57 = vector.broadcast %c1_i32 : i32 to vector<1x1x3xi32>
      %58 = arith.cmpi eq, %54, %57 : vector<1x1x3xi32>
      %59 = vector.shape_cast %58 : vector<1x1x3xi1> to vector<1x1x3xi1>
      %60 = vector.broadcast %59 : vector<1x1x3xi1> to vector<5x1x3xi1>
      %61 = vector.shape_cast %46 : vector<5x1x1xf32> to vector<5x1x1xf32>
      %62 = vector.broadcast %61 : vector<5x1x1xf32> to vector<5x1x3xf32>
      %63 = vector.shape_cast %53 : vector<5x1x1xf32> to vector<5x1x1xf32>
      %64 = vector.broadcast %63 : vector<5x1x1xf32> to vector<5x1x3xf32>
      %65 = arith.select %60, %62, %64 : vector<5x1x3xi1>, vector<5x1x3xf32>
      %66 = vector.shape_cast %56 : vector<1x1x3xi1> to vector<1x1x3xi1>
      %67 = vector.broadcast %66 : vector<1x1x3xi1> to vector<5x1x3xi1>
      %68 = vector.shape_cast %43 : vector<5x1x1xf32> to vector<5x1x1xf32>
      %69 = vector.broadcast %68 : vector<5x1x1xf32> to vector<5x1x3xf32>
      %70 = arith.select %67, %69, %65 : vector<5x1x3xi1>, vector<5x1x3xf32>
      %c0_33 = arith.constant 0 : index
      %c0_34 = arith.constant 0 : index
      %c0_35 = arith.constant 0 : index
      %71 = vector.load %arg5[%c0_33, %c0_34, %c0_35] : memref<5x1x3xf32, #tpu.memory_space<vmem>>, vector<5x1x3xf32>
      tpu.vector_store %arg5[%c0_33, %c0_34, %c0_35], %70 {strides = array<i32>} : memref<5x1x3xf32, #tpu.memory_space<vmem>>, vector<5x1x3xf32>,
    } else {
    }
    return
  }
  func.func @transform_0(%arg0: i32, %arg1: i32) -> (i32, i32, i32) {
    %c0_i32 = arith.constant 0 : i32
    %c0_i32_0 = arith.constant 0 : i32
    %c0_i32_1 = arith.constant 0 : i32
    return %arg0, %c0_i32, %c0_i32_0 : i32, i32, i32
  }
  func.func @transform_1(%arg0: i32, %arg1: i32) -> (i32, i32, i32) {
    %c0_i32 = arith.constant 0 : i32
    %c0_i32_0 = arith.constant 0 : i32
    return %arg0, %c0_i32, %arg1 : i32, i32, i32
  }
  func.func @transform_2(%arg0: i32, %arg1: i32) -> (i32, i32, i32) {
    %c0_i32 = arith.constant 0 : i32
    %c0_i32_0 = arith.constant 0 : i32
    %c0_i32_1 = arith.constant 0 : i32
    return %arg0, %c0_i32, %c0_i32_0 : i32, i32, i32
  }
  func.func @transform_3(%arg0: i32, %arg1: i32) -> (i32, i32, i32) {
    %c0_i32 = arith.constant 0 : i32
    %c0_i32_0 = arith.constant 0 : i32
    %c0_i32_1 = arith.constant 0 : i32
    return %arg0, %c0_i32, %c0_i32_0 : i32, i32, i32
  }
}

</mosaic_0001>

<bundles_post_ra>
// kernel: tpu_custom_call.1
= control target key start
LH: loop header
LB: loop body
LE: loop exit
PB: predicated region body
PF: predicated region fallthrough
CT: control target
= control target key end

     0   :  { %s1013_s12 = smov 0   ;;  %s1015_s13 = smov 0   ;;  %s1271_s0 = inlined_call_operand.vmem [shape: f32[10,16,3], index: 0, kind: input, shape index: {}]   ;;  %s1272_s1 = inlined_call_operand.vmem [shape: f32[10,3,128], index: 1, kind: input, shape index: {}]   ;;  %s1273_s2 = inlined_call_operand.vmem [shape: f32[10,16,3], index: 2, kind: input, shape index: {}]   ;;  %s1274_s3 = inlined_call_operand.vmem [shape: f32[10,1,3], index: 3, kind: output, shape index: {}]  }
   0x1   :  { %s1017_s14 = smov 0  }
   0x2 LB: > { %s25_s15 = sadd.s32 1, %s983_s13  ;;  %p918_p0 = scmp.ge.s32.totalorder %s987_s14, 1  ;;  %s987_s14 = sphi %s1017_s14, %s13_s14   ;;  %s983_s13 = sphi %s1015_s13, %s1276_s13   ;;  %s979_s12 = sphi %s1013_s12, %s1275_s12  }
   0x3   : > { %p27_p1 = scmp.ge.s32.totalorder %s25_s15, 2  ;;  %p179_p2 = scmp.lt.s32.totalorder %s987_s14, 3 }
   0x5   : > { %s1278_s15 = smov (%p27_p1, %s25_s15), 0  ;;  %p180_p3 = pnand %p918_p0, %p179_p2 }
   0x6   : > { %s217_s16 = smul.u32 (!%p180_p3), 5, %s979_s12 }
   0x7   : > { %183 = sbr.rel (%p180_p3) target bundleno = 384 (0x180), region = 32 }
   0x8   : > { %p218_p4 = scmp.lt.s32.totalorder (!%p180_p3), %s217_s16, 9 }
   0xc   : > { %v989_v0 = vmov 0   ;;  %s1280_s16 = smov (!%p218_p4, %s217_s16), 9  ;;  %v990_v11 = vmov 1   ;;  %v991_v12 = vmov 2   ;;  %v992_v31 = vmov 0.0  }
   0xd   : > { %958 = vset.pattern.permute.xlu2 %v989_v0  ;;  %957 = vset.pattern.permute.xlu1 %v989_v0  ;;  %s926_s17 = sshll.u32 %s1280_s16, 4  ;;  %s921_s21 = sshll.u32 %s1280_s16, 2  ;;  %259 = vst [vmem:[#allocation3] sm:$0x1] %v992_v31  ;;  %vm738_vm1 = vcmask 23552   ;;  %vm692_vm2 = vcmask 1040384  }
   0xe   : > { %956 = vset.pattern.permute.xlu0 %v989_v0  ;;  %s222_s20 = scalar_lea.vmem %s1271_s0, %s926_s17  ;;  %s1105_s24 = scalar_lea.vmem %s1272_s1, %s921_s21  ;;  %260 = vst [vmem:[#allocation3 + $0x1] sm:$0x1] %v992_v31  ;;  %vm822_vm5 = vcmask 16384  }
   0xf   : > { %v1039_v1 = vld [vmem:[%s222_s20 + $0x20] sm:$0xff]  ;;  %v1041_v2 = vld [vmem:[%s222_s20 + $0x10] sm:$0xff]  ;;  %v1048_v4 = vld [vmem:[%s222_s20 + $0x28] sm:$0xff]  ;;  %261 = vst [vmem:[#allocation3 + $0x2] sm:$0x1] %v992_v31  ;;  %s1156_s27 = scalar_lea.vmem %s1273_s2, %s926_s17  ;;  %s1230_s30 = scalar_lea.vmem %s1274_s3, %s1280_s16 }
  0x10   : > { %v1043_v3 = vld [vmem:[%s222_s20] sm:$0xff]  ;;  %301 = vperm.xlu2 %958, %v1039_v1   ;;  %291 = vperm.xlu1 %957, %v1041_v2   ;;  %v1050_v5 = vld [vmem:[%s222_s20 + $0x18] sm:$0xff]  ;;  %v1052_v6 = vld [vmem:[%s222_s20 + $0x8] sm:$0xff]  ;;  %262 = vst [vmem:[#allocation3 + $0x3] sm:$0x1] %v992_v31 }
  0x11   : > { %281 = vperm.xlu0 %956, %v1043_v3   ;;  %v1057_v7 = vld [vmem:[%s222_s20 + $0x40] sm:$0xff]  ;;  %v1059_v8 = vld [vmem:[%s222_s20 + $0x38] sm:$0xff]  ;;  %v1061_v9 = vld [vmem:[%s222_s20 + $0x30] sm:$0xff]  ;;  %263 = vst [vmem:[#allocation3 + $0x4] sm:$0x1] %v992_v31 }
  0x12   : > { %v1066_v10 = vld [vmem:[%s222_s20 + $0x48] sm:$0xff]  ;;  %v1112_v27 = vld [vmem:[%s1105_s24 + $0x4] sm:$0x7]  ;;  %v274_v43 = vld [vmem:[%s1105_s24] sm:$0x7] }
  0x13   : > { %v330_v29 = vperm.slane %v1112_v27, 0  ;;  %v395_v30 = vperm.slane %v1112_v27, 1  ;;  %v470_v32 = vperm.slane %v1112_v27, 2  ;;  %v329_v47 = vperm.slane %v274_v43, 0  ;;  %v276_v49 = vld [vmem:[%s1105_s24 + $0x8] sm:$0x7] }
  0x14   : > { %v394_v48 = vperm.slane %v274_v43, 1  ;;  %v469_v52 = vperm.slane %v274_v43, 2  ;;  %v331_v53 = vperm.slane %v276_v49, 0  ;;  %v396_v54 = vperm.slane %v276_v49, 1  ;;  %v1134_v31 = vld [vmem:[%s1105_s24 + $0xc] sm:$0x7] }
  0x15   : > { %v471_v59 = vperm.slane %v276_v49, 2 }
  0x18   : > { %306 = vperm.xlu2 %958, %v1048_v4   ;;  %296 = vperm.xlu1 %957, %v1050_v5  }
  0x19   : > { %286 = vperm.xlu0 %956, %v1052_v6  }
  0x20   : > { %321 = vperm.xlu2 %958, %v1057_v7   ;;  %316 = vperm.xlu1 %957, %v1059_v8  }
  0x21   : > { %311 = vperm.xlu0 %956, %v1061_v9  }
  0x28   : > { %960 = vset.pattern.permute.xlu2 %v990_v11  ;;  %959 = vset.pattern.permute.xlu1 %v990_v11 }
  0x29   : > { %326 = vperm.xlu0 %956, %v1066_v10   ;;  %359 = vperm.xlu2 %960, %v1052_v6  }
  0x2a   : > { %355 = vperm.xlu1 %959, %v1043_v3  }
  0x31   : > { %961 = vset.pattern.permute.xlu0 %v990_v11  ;;  %371 = vperm.xlu2 %960, %v1039_v1  }
  0x32   : > { %367 = vperm.xlu1 %959, %v1050_v5   ;;  %363 = vperm.xlu0 %961, %v1041_v2  }
  0x39   : > { %379 = vperm.xlu2 %960, %v1061_v9  }
  0x3a   : > { %375 = vperm.xlu1 %959, %v1048_v4   ;;  %383 = vperm.xlu0 %961, %v1059_v8  }
  0x41   : > { %391 = vperm.xlu2 %960, %v1066_v10  }
  0x42   : > { %387 = vperm.xlu1 %959, %v1057_v7   ;;  %962 = vset.pattern.permute.xlu0 %v991_v12 }
  0x43   : > { %430 = vperm.xlu0 %962, %v1043_v3  }
  0x49   : > { %964 = vset.pattern.permute.xlu2 %v991_v12 }
  0x4a   : > { %963 = vset.pattern.permute.xlu1 %v991_v12  ;;  %438 = vperm.xlu2 %964, %v1041_v2  }
  0x4b   : > { %434 = vperm.xlu1 %963, %v1052_v6   ;;  %450 = vperm.xlu0 %962, %v1048_v4  }
  0x52   : > { %446 = vperm.xlu2 %964, %v1039_v1  }
  0x53   : > { %442 = vperm.xlu1 %963, %v1050_v5   ;;  %462 = vperm.xlu0 %962, %v1057_v7  }
  0x5a   : > { %458 = vperm.xlu2 %964, %v1059_v8  }
  0x5b   : > { %454 = vperm.xlu1 %963, %v1061_v9  }
  0x63   : > { %466 = vperm.xlu1 %963, %v1066_v10  }
  0x6a   : > { %v302_v13 = vpop.permute.xlu2 %301 }
  0x6b   : > { %v338_v61 = vsub.f32 %v302_v13, %v331_v53  ;;  %v332_v13 = vperm.slane %v1134_v31, 0 }
  0x72   : > { %v1089_v14 = vpop.permute.xlu2 %306 }
  0x7a   : > { %v1091_v15 = vpop.permute.xlu2 %321 }
  0x82   : > { %v292_v16 = vpop.permute.xlu1 %291 }
  0x83   : > { %v282_v17 = vpop.permute.xlu0 %281  ;;  %v360_v18 = vpop.permute.xlu2 %359  ;;  %v336_v33 = vsub.f32 %v292_v16, %v330_v29 }
  0x84   : > { %v334_v51 = vsub.f32 %v282_v17, %v329_v47  ;;  %v400_v62 = vsub.f32 %v360_v18, %v394_v48  ;;  %v339_v17 = vsub.f32 %v1089_v14, %v331_v53  ;;  %v1141_v53 = vld [vmem:[%s1105_s24 + $0x10] sm:$0x7] }
  0x85   : > { %v346_v39 = vmul.f32 %v336_v33, %v336_v33 }
  0x86   : > { %v344_v58 = vmul.f32 %v334_v51, %v334_v51 }
  0x8a   : > { %v1093_v19 = vpop.permute.xlu1 %296 }
  0x8b   : > { %v287_v20 = vpop.permute.xlu0 %286  ;;  %v372_v21 = vpop.permute.xlu2 %371 }
  0x8c   : > { %v335_v63 = vsub.f32 %v287_v20, %v329_v47  ;;  %v403_v0 = vsub.f32 %v372_v21, %v396_v54  ;;  %v349_v21 = vmul.f32 %v339_v17, %v339_v17  ;;  %v397_v47 = vperm.slane %v1134_v31, 1  ;;  %v709_v17 = vld [vmem:[%s1156_s27 + $0x8] sm:$0xff] }
  0x8d   : > { %v719_v27 = vsub.f32 %v1052_v6, %v709_v17  ;;  %v712_v6 = vld [vmem:[%s1156_s27 + $0x20] sm:$0xff] }
  0x92   : > { %v1095_v22 = vpop.permute.xlu1 %316 }
  0x93   : > { %v1097_v23 = vpop.permute.xlu0 %311  ;;  %v1099_v24 = vpop.permute.xlu2 %379 }
  0x9b   : > { %v1107_v25 = vpop.permute.xlu0 %326  ;;  %v1109_v26 = vpop.permute.xlu2 %391 }
  0x9c   : > { %v356_v28 = vpop.permute.xlu1 %355 }
  0x9d   : > { %v399_v50 = vsub.f32 %v356_v28, %v394_v48 }
  0x9f   : > { %v409_v55 = vmul.f32 %v399_v50, %v399_v50 }
  0xa1   : > { %v419_v12 = vadd.f32 %v409_v55, %v344_v58 }
  0xa4   : > { %v368_v34 = vpop.permute.xlu1 %367  ;;  %v364_v35 = vpop.permute.xlu0 %363 }
  0xa5   : > { %v401_v36 = vsub.f32 %v364_v35, %v395_v30  ;;  %v439_v37 = vpop.permute.xlu2 %438  ;;  %v402_v48 = vsub.f32 %v368_v34, %v395_v30  ;;  %v333_v30 = vperm.slane %v1141_v53, 0 }
  0xa6   : > { %v476_v38 = vsub.f32 %v439_v37, %v470_v32  ;;  %v410_v37 = vmul.f32 %v400_v62, %v400_v62  ;;  %v572_v62 = vlaneseq }
  0xa7   : > { %v411_v40 = vmul.f32 %v401_v36, %v401_v36  ;;  %v348_v36 = vmul.f32 %v338_v61, %v338_v61  ;;  %v341_v61 = vsub.f32 %v1095_v22, %v332_v13 }
  0xa8   : > { %v486_v41 = vmul.f32 %v476_v38, %v476_v38  ;;  %v345_v38 = vmul.f32 %v335_v63, %v335_v63 }
  0xa9   : > { %v421_v42 = vadd.f32 %v411_v40, %v346_v39  ;;  %v413_v39 = vmul.f32 %v403_v0, %v403_v0 }
  0xaa   : > { %v420_v14 = vadd.f32 %v410_v37, %v345_v38 }
  0xab   : > { %v1124_v44 = vadd.f32 %v486_v41, %v421_v42 }
  0xac   : > { %v376_v45 = vpop.permute.xlu1 %375  ;;  %v1126_v46 = vpop.permute.xlu0 %383 }
  0xad   : > { %636 = vmin.xlane.f32.xlu1 %v1124_v44  ;;  %v447_v11 = vpop.permute.xlu2 %446  ;;  %v404_v16 = vsub.f32 %v376_v45, %v396_v54  ;;  %v423_v45 = vadd.f32 %v413_v39, %v348_v36  ;;  %v337_v54 = vsub.f32 %v1093_v19, %v330_v29  ;;  %v412_v19 = vmul.f32 %v402_v48, %v402_v48 }
  0xae   : > { %v478_v33 = vsub.f32 %v447_v11, %v471_v59  ;;  %v406_v37 = vsub.f32 %v1126_v46, %v397_v47 }
  0xaf   : > { %v414_v40 = vmul.f32 %v404_v16, %v404_v16  ;;  %v347_v34 = vmul.f32 %v337_v54, %v337_v54 }
  0xb0   : > { %v488_v41 = vmul.f32 %v478_v33, %v478_v33 }
  0xb1   : > { %v424_v49 = vadd.f32 %v414_v40, %v349_v21  ;;  %v422_v22 = vadd.f32 %v412_v19, %v347_v34  ;;  %v342_v40 = vsub.f32 %v1091_v15, %v333_v30  ;;  %v722_v19 = vsub.f32 %v1039_v1, %v712_v6 }
  0xb2   : > { %v1147_v58 = vadd.f32 %v488_v41, %v423_v45 }
  0xb4   : > { %v1130_v56 = vpop.permute.xlu1 %387 }
  0xb5   : > { %v431_v57 = vpop.permute.xlu0 %430  ;;  %v459_v11 = vpop.permute.xlu2 %458 }
  0xb6   : > { %v474_v60 = vsub.f32 %v431_v57, %v469_v52 }
  0xb8   : > { %v484_v28 = vmul.f32 %v474_v60, %v474_v60  ;;  %v398_v60 = vperm.slane %v1141_v53, 1 }
  0xba   : > { %v494_v35 = vadd.f32 %v484_v28, %v419_v12  ;;  %v408_v36 = vsub.f32 %v1109_v26, %v398_v60 }
  0xbc   : > { %632 = vmin.xlane.f32.xlu2 %v494_v35  ;;  %v418_v46 = vmul.f32 %v408_v36, %v408_v36 }
  0xbd   : > { %v435_v18 = vpop.permute.xlu1 %434  ;;  %v451_v20 = vpop.permute.xlu0 %450 }
  0xbe   : > { %v475_v42 = vsub.f32 %v435_v18, %v469_v52  ;;  %v479_v43 = vsub.f32 %v451_v20, %v471_v59  ;;  %v340_v52 = vsub.f32 %v1097_v23, %v332_v13  ;;  %v405_v59 = vsub.f32 %v1099_v24, %v397_v47  ;;  %v710_v47 = vld [vmem:[%s1156_s27 + $0x10] sm:$0xff] }
  0xbf   : > { %v472_v24 = vperm.slane %v1134_v31, 2  ;;  %v1169_v18 = vand.u32 127, %v572_v62  ;;  %v587_v62 = vld [vmem:[#allocation3 + $0x2] sm:$0x1] }
  0xc0   : > { %v485_v50 = vmul.f32 %v475_v42, %v475_v42  ;;  %v489_v51 = vmul.f32 %v479_v43, %v479_v43  ;;  %v350_v0 = vmul.f32 %v340_v52, %v340_v52  ;;  %v415_v33 = vmul.f32 %v405_v59, %v405_v59 }
  0xc1   : > { %v481_v13 = vsub.f32 %v459_v11, %v472_v24  ;;  %v416_v42 = vmul.f32 %v406_v37, %v406_v37  ;;  %vm577_vm0 = vcmp.lt.s32.totalorder %v1169_v18, 64  ;;  %v352_v37 = vmul.f32 %v342_v40, %v342_v40 }
  0xc2   : > { %v495_v55 = vadd.f32 %v485_v50, %v420_v14  ;;  %v499_v57 = vadd.f32 %v489_v51, %v424_v49  ;;  %v425_v26 = vadd.f32 %v415_v33, %v350_v0  ;;  %v473_v14 = vperm.slane %v1141_v53, 2  ;;  %v708_v53 = vld [vmem:[%s1156_s27] sm:$0xff] }
  0xc3   : > { %v491_v48 = vmul.f32 %v481_v13, %v481_v13  ;;  %v729_v50 = vmul.f32 %v719_v27, %v719_v27  ;;  %vm807_vm3 = vcmp.eq.s32.totalorder %v1169_v18, 1  ;;  %vm806_vm4 = vcmp.eq.s32.totalorder %v1169_v18, 0 }
  0xc4   : > { %634 = vmin.xlane.f32.xlu0 %v495_v55  ;;  %v534_v23 = vmin.f32 %v494_v35, %v495_v55  ;;  %v548_v29 = vmin.f32 %v1147_v58, %v499_v57  ;;  %v343_v35 = vsub.f32 %v1107_v25, %v333_v30 }
  0xc5   : > { %v443_v63 = vpop.permute.xlu1 %442  ;;  %v463_v54 = vpop.permute.xlu0 %462  ;;  %v742_v11 = vsel %vm738_vm1, %v729_v50, 0.0 }
  0xc6   : > { %v535_v12 = vrot.slane %v534_v23, 4  ;;  %v477_v16 = vsub.f32 %v443_v63, %v470_v32  ;;  %v549_v28 = vrot.slane %v548_v29, 4  ;;  %v351_v32 = vmul.f32 %v341_v61, %v341_v61 }
  0xc7   : > { %v353_v41 = vmul.f32 %v343_v35, %v343_v35  ;;  %v482_v0 = vsub.f32 %v463_v54, %v473_v14 }
  0xc8   : > { %v536_v38 = vmin.f32 %v534_v23, %v535_v12  ;;  %v487_v31 = vmul.f32 %v477_v16, %v477_v16  ;;  %v550_v39 = vmin.f32 %v548_v29, %v549_v28  ;;  %v426_v30 = vadd.f32 %v416_v42, %v351_v32  ;;  %v585_v23 = vld [vmem:[#allocation3] sm:$0x1]  ;;  %v715_v32 = vld [vmem:[%s1156_s27 + $0x38] sm:$0xff] }
  0xca   : > { %v537_v20 = vrot.slane %v536_v38, 2  ;;  %v497_v25 = vadd.f32 %v487_v31, %v422_v22  ;;  %v551_v21 = vrot.slane %v550_v39, 2  ;;  %v1183_v12 = vadd.f32 %v491_v48, %v426_v30  ;;  %v713_v31 = vld [vmem:[%s1156_s27 + $0x28] sm:$0xff] }
  0xcb   : > { %v723_v6 = vsub.f32 %v1048_v4, %v713_v31  ;;  %v725_v48 = vsub.f32 %v1059_v8, %v715_v32 }
  0xcc   : > { %v538_v43 = vmin.f32 %v536_v38, %v537_v20  ;;  %v541_v15 = vmin.f32 %v1124_v44, %v497_v25  ;;  %638 = vmin.xlane.f32.xlu2 %v497_v25  ;;  %642 = vmin.xlane.f32.xlu0 %v499_v57  ;;  %v552_v45 = vmin.f32 %v550_v39, %v551_v21  ;;  %v711_v20 = vld [vmem:[%s1156_s27 + $0x18] sm:$0xff] }
  0xcd   : > { %v455_v49 = vpop.permute.xlu1 %454  ;;  %v407_v44 = vsub.f32 %v1130_v56, %v398_v60  ;;  %v720_v57 = vsub.f32 %v1041_v2, %v710_v47  ;;  %v492_v39 = vmul.f32 %v482_v0, %v482_v0  ;;  %v428_v21 = vadd.f32 %v418_v46, %v353_v41 }
  0xce   : > { %v539_v51 = vrot.slane %v538_v43, 1  ;;  %v542_v52 = vrot.slane %v541_v15, 4  ;;  %v480_v55 = vsub.f32 %v455_v49, %v472_v24  ;;  %v553_v59 = vrot.slane %v552_v45, 1 }
  0xcf   : > { %v718_v24 = vsub.f32 %v1043_v3, %v708_v53  ;;  %v417_v16 = vmul.f32 %v407_v44, %v407_v44  ;;  %v730_v33 = vmul.f32 %v720_v57, %v720_v57  ;;  %v732_v3 = vmul.f32 %v722_v19, %v722_v19  ;;  %v588_v57 = vld [vmem:[#allocation3 + $0x3] sm:$0x1] }
  0xd0   : > { %v540_v29 = vmin.f32 %v538_v43, %v539_v51  ;;  %v543_v34 = vmin.f32 %v541_v15, %v542_v52  ;;  %v490_v61 = vmul.f32 %v480_v55, %v480_v55  ;;  %v554_v63 = vmin.f32 %v552_v45, %v553_v59  ;;  %v586_v43 = vld [vmem:[#allocation3 + $0x1] sm:$0x1] }
  0xd1   : > { %v728_v38 = vmul.f32 %v718_v24, %v718_v24  ;;  %v751_v40 = vsel %vm738_vm1, %v732_v3, 0.0  ;;  %v733_v4 = vmul.f32 %v723_v6, %v723_v6  ;;  %v735_v8 = vmul.f32 %v725_v48, %v725_v48  ;;  %v716_v59 = vld [vmem:[%s1156_s27 + $0x40] sm:$0xff] }
  0xd2   : > { %v580_v56 = vsel %vm577_vm0, %v540_v29, 0.0  ;;  %v544_v60 = vrot.slane %v543_v34, 2  ;;  %v500_v2 = vadd.f32 %v490_v61, %v425_v26  ;;  %v582_v1 = vsel %vm577_vm0, %v554_v63, 0.0 }
  0xd3   : > { %v590_v28 = vadd.f32 %v585_v23, %v580_v56  ;;  %v592_v17 = vadd.f32 %v587_v62, %v582_v1  ;;  %v427_v26 = vadd.f32 %v417_v16, %v352_v37  ;;  %v739_v47 = vsel %vm738_vm1, %v728_v38, 0.0 }
  0xd4   : > { %v545_v35 = vmin.f32 %v543_v34, %v544_v60  ;;  %644 = vmin.xlane.f32.xlu1 %v500_v2  ;;  %640 = vmin.xlane.f32.xlu2 %v1147_v58  ;;  %v555_v36 = vmin.f32 %v500_v2, %v1183_v12  ;;  %v745_v58 = vsel %vm738_vm1, %v730_v33, 0.0  ;;  %v754_v23 = vsel %vm738_vm1, %v733_v4, 0.0  ;;  %v717_v2 = vld [vmem:[%s1156_s27 + $0x48] sm:$0xff] }
  0xd5   : > { %595 = vst [vmem:[#allocation3] sm:$0x1] %v590_v28  ;;  %743 = vadd.xlane.f32.xlu0 %v742_v11  ;;  %v467_v22 = vpop.permute.xlu1 %466  ;;  %v502_v49 = vadd.f32 %v492_v39, %v427_v26  ;;  %v726_v34 = vsub.f32 %v1057_v7, %v716_v59  ;;  %v760_v62 = vsel %vm738_vm1, %v735_v8, 0.0  ;;  %v589_v7 = vld [vmem:[#allocation3 + $0x4] sm:$0x1] }
  0xd6   : > { %v546_v13 = vrot.slane %v545_v35, 1  ;;  %597 = vst [vmem:[#allocation3 + $0x2] sm:$0x1] %v592_v17  ;;  %v483_v27 = vsub.f32 %v467_v22, %v473_v14  ;;  %v556_v25 = vrot.slane %v555_v36, 4  ;;  %v721_v14 = vsub.f32 %v1050_v5, %v711_v20  ;;  %v714_v5 = vld [vmem:[%s1156_s27 + $0x30] sm:$0xff] }
  0xd7   : > { %v724_v61 = vsub.f32 %v1061_v9, %v714_v5  ;;  %v736_v56 = vmul.f32 %v726_v34, %v726_v34  ;;  %v727_v17 = vsub.f32 %v1066_v10, %v717_v2 }
  0xd8   : > { %v547_v42 = vmin.f32 %v545_v35, %v546_v13  ;;  %v493_v15 = vmul.f32 %v483_v27, %v483_v27  ;;  %v557_v45 = vmin.f32 %v555_v36, %v556_v25  ;;  %v731_v55 = vmul.f32 %v721_v14, %v721_v14 }
  0xd9   : > { %v734_v60 = vmul.f32 %v724_v61, %v724_v61  ;;  %v763_v9 = vsel %vm738_vm1, %v736_v56, 0.0  ;;  %v737_v3 = vmul.f32 %v727_v17, %v727_v17 }
  0xda   : > { %v581_v41 = vsel %vm577_vm0, %v547_v42, 0.0  ;;  %v558_v46 = vrot.slane %v557_v45, 2  ;;  %v503_v50 = vadd.f32 %v493_v15, %v428_v21  ;;  %v748_v29 = vsel %vm738_vm1, %v731_v55, 0.0 }
  0xdb   : > { %v591_v51 = vadd.f32 %v586_v43, %v581_v41  ;;  %v757_v28 = vsel %vm738_vm1, %v734_v60, 0.0  ;;  %v766_v37 = vsel %vm738_vm1, %v737_v3, 0.0 }
  0xdc   : > { %746 = vadd.xlane.f32.xlu1 %v745_v58  ;;  %740 = vadd.xlane.f32.xlu2 %v739_v47  ;;  %v559_v54 = vmin.f32 %v557_v45, %v558_v46  ;;  %v562_v52 = vmin.f32 %v502_v49, %v503_v50  ;;  %v687_v36 = vld [vmem:[#allocation3] sm:$0x1] }
  0xdd   : > { %596 = vst [vmem:[#allocation3 + $0x1] sm:$0x1] %v591_v51  ;;  %752 = vadd.xlane.f32.xlu0 %v751_v40  ;;  %v693_v22 = vsel %vm692_vm2, %v687_v36, 0.0  ;;  %v689_v13 = vld [vmem:[#allocation3 + $0x2] sm:$0x1] }
  0xde   : > { %v560_v53 = vrot.slane %v559_v54, 1  ;;  %v563_v30 = vrot.slane %v562_v52, 4  ;;  %v699_v32 = vsel %vm692_vm2, %v689_v13, 0.0 }
  0xe0   : > { %v561_v44 = vmin.f32 %v559_v54, %v560_v53  ;;  %v564_v19 = vmin.f32 %v562_v52, %v563_v30 }
  0xe2   : > { %v583_v63 = vsel %vm577_vm0, %v561_v44, 0.0  ;;  %v565_v0 = vrot.slane %v564_v19, 2 }
  0xe3   : > { %v593_v11 = vadd.f32 %v588_v57, %v583_v63 }
  0xe4   : > { %755 = vadd.xlane.f32.xlu1 %v754_v23  ;;  %749 = vadd.xlane.f32.xlu2 %v748_v29  ;;  %v566_v24 = vmin.f32 %v564_v19, %v565_v0  ;;  %v688_v10 = vld [vmem:[#allocation3 + $0x1] sm:$0x1] }
  0xe5   : > { %761 = vadd.xlane.f32.xlu0 %v760_v62  ;;  %598 = vst [vmem:[#allocation3 + $0x3] sm:$0x1] %v593_v11  ;;  %v696_v31 = vsel %vm692_vm2, %v688_v10, 0.0 }
  0xe6   : > { %v567_v1 = vrot.slane %v566_v24, 1 }
  0xe8   : > { %v568_v16 = vmin.f32 %v566_v24, %v567_v1 }
  0xea   : > { %v584_v33 = vsel %vm577_vm0, %v568_v16, 0.0 }
  0xeb   : > { %v594_v35 = vadd.f32 %v589_v7, %v584_v33 }
  0xec   : > { %764 = vadd.xlane.f32.xlu1 %v763_v9  ;;  %758 = vadd.xlane.f32.xlu2 %v757_v28  ;;  %v690_v38 = vld [vmem:[#allocation3 + $0x3] sm:$0x1] }
  0xed   : > { %646 = vmin.xlane.f32.xlu0 %v1183_v12  ;;  %599 = vst [vmem:[#allocation3 + $0x4] sm:$0x1] %v594_v35  ;;  %v702_v39 = vsel %vm692_vm2, %v690_v38, 0.0 }
  0xf4   : > { %648 = vmin.xlane.f32.xlu1 %v502_v49  ;;  %767 = vadd.xlane.f32.xlu2 %v766_v37  ;;  %v691_v12 = vld [vmem:[#allocation3 + $0x4] sm:$0x1] }
  0xf5   : > { %694 = vadd.xlane.f32.xlu0 %v693_v22  ;;  %v705_v27 = vsel %vm692_vm2, %v691_v12, 0.0 }
  0xfc   : > { %697 = vadd.xlane.f32.xlu1 %v696_v31  ;;  %650 = vmin.xlane.f32.xlu2 %v503_v50 }
  0xfd   : > { %703 = vadd.xlane.f32.xlu0 %v702_v39 }
 0x104   : > { %706 = vadd.xlane.f32.xlu1 %v705_v27  ;;  %700 = vadd.xlane.f32.xlu2 %v699_v32 }
 0x120   : > { %v637_v21 = vpop.xlane.xlu1 %636 }
 0x12f   : > { %v633_v20 = vpop.xlane.xlu2 %632 }
 0x137   : > { %v635_v25 = vpop.xlane.xlu0 %634 }
 0x138   : > { %v652_v47 = vadd.f32 %v635_v25, %v633_v20 }
 0x13a   : > { %v653_v41 = vrot.slane %v652_v47, 4 }
 0x13c   : > { %v654_v54 = vadd.f32 %v653_v41, %v652_v47 }
 0x13e   : > { %v655_v53 = vrot.slane %v654_v54, 2 }
 0x13f   : > { %v639_v26 = vpop.xlane.xlu2 %638  ;;  %v643_v58 = vpop.xlane.xlu0 %642 }
 0x140   : > { %v659_v46 = vadd.f32 %v639_v26, %v637_v21  ;;  %v656_v34 = vadd.f32 %v655_v53, %v654_v54 }
 0x142   : > { %v660_v55 = vrot.slane %v659_v46, 4  ;;  %v657_v16 = vrot.slane %v656_v34, 1 }
 0x144   : > { %v661_v5 = vadd.f32 %v660_v55, %v659_v46  ;;  %v658_v38 = vadd.f32 %v657_v16, %v656_v34 }
 0x146   : > { %v662_v63 = vrot.slane %v661_v5, 2 }
 0x147   : > { %v645_v42 = vpop.xlane.xlu1 %644  ;;  %v641_v43 = vpop.xlane.xlu2 %640 }
 0x148   : > { %v744_v15 = vpop.xlane.xlu0 %743  ;;  %v666_v57 = vadd.f32 %v643_v58, %v641_v43  ;;  %v663_v9 = vadd.f32 %v662_v63, %v661_v5 }
 0x14a   : > { %v667_v60 = vrot.slane %v666_v57, 4  ;;  %v664_v26 = vrot.slane %v663_v9, 1 }
 0x14c   : > { %v668_v3 = vadd.f32 %v667_v60, %v666_v57  ;;  %v665_v47 = vadd.f32 %v664_v26, %v663_v9 }
 0x14e   : > { %v669_v58 = vrot.slane %v668_v3, 2 }
 0x14f   : > { %v747_v40 = vpop.xlane.xlu1 %746  ;;  %v741_v45 = vpop.xlane.xlu2 %740 }
 0x150   : > { %v753_v6 = vpop.xlane.xlu0 %752  ;;  %v769_v48 = vadd.f32 %v744_v15, %v741_v45 }
 0x152   : > { %v770_v14 = vrot.slane %v769_v48, 4 }
 0x154   : > { %v771_v49 = vadd.f32 %v770_v14, %v769_v48 }
 0x156   : > { %v772_v59 = vrot.slane %v771_v49, 2 }
 0x157   : > { %v756_v50 = vpop.xlane.xlu1 %755  ;;  %v750_v51 = vpop.xlane.xlu2 %749 }
 0x158   : > { %v762_v52 = vpop.xlane.xlu0 %761  ;;  %v776_v4 = vadd.f32 %v750_v51, %v747_v40  ;;  %v783_v30 = vadd.f32 %v756_v50, %v753_v6  ;;  %v773_v19 = vadd.f32 %v772_v59, %v771_v49  ;;  %v670_v6 = vadd.f32 %v669_v58, %v668_v3 }
 0x15a   : > { %v777_v8 = vrot.slane %v776_v4, 4  ;;  %v784_v11 = vrot.slane %v783_v30, 4  ;;  %v774_v2 = vrot.slane %v773_v19, 1  ;;  %v671_v53 = vrot.slane %v670_v6, 1 }
 0x15c   : > { %v778_v44 = vadd.f32 %v777_v8, %v776_v4  ;;  %v785_v17 = vadd.f32 %v784_v11, %v783_v30  ;;  %v775_v22 = vadd.f32 %v774_v2, %v773_v19  ;;  %v672_v19 = vadd.f32 %v671_v53, %v670_v6 }
 0x15e   : > { %v779_v24 = vrot.slane %v778_v44, 2  ;;  %v786_v32 = vrot.slane %v785_v17, 2 }
 0x15f   : > { %v765_v23 = vpop.xlane.xlu1 %764  ;;  %v759_v29 = vpop.xlane.xlu2 %758 }
 0x160   : > { %v647_v61 = vpop.xlane.xlu0 %646  ;;  %v790_v62 = vadd.f32 %v762_v52, %v759_v29  ;;  %v780_v33 = vadd.f32 %v779_v24, %v778_v44  ;;  %v787_v40 = vadd.f32 %v786_v32, %v785_v17 }
 0x161   : > { %v673_v0 = vadd.f32 %v647_v61, %v645_v42 }
 0x162   : > { %v791_v56 = vrot.slane %v790_v62, 4  ;;  %v781_v20 = vrot.slane %v780_v33, 1  ;;  %v788_v55 = vrot.slane %v787_v40, 1 }
 0x163   : > { %v674_v1 = vrot.slane %v673_v0, 4 }
 0x164   : > { %v792_v7 = vadd.f32 %v791_v56, %v790_v62  ;;  %v782_v45 = vadd.f32 %v781_v20, %v780_v33  ;;  %v789_v57 = vadd.f32 %v788_v55, %v787_v40 }
 0x165   : > { %v675_v28 = vadd.f32 %v674_v1, %v673_v0 }
 0x166   : > { %v793_v35 = vrot.slane %v792_v7, 2 }
 0x167   : > { %v676_v36 = vrot.slane %v675_v28, 2  ;;  %v649_v37 = vpop.xlane.xlu1 %648  ;;  %v768_v10 = vpop.xlane.xlu2 %767 }
 0x168   : > { %v794_v31 = vadd.f32 %v793_v35, %v792_v7  ;;  %v695_v39 = vpop.xlane.xlu0 %694  ;;  %v797_v12 = vadd.f32 %v768_v10, %v765_v23 }
 0x169   : > { %v677_v13 = vadd.f32 %v676_v36, %v675_v28  ;;  %v810_v27 = vsel %vm807_vm3, %v695_v39, %v775_v22 }
 0x16a   : > { %v817_v25 = vsel %vm806_vm4, %v658_v38, %v810_v27  ;;  %v798_v21 = vrot.slane %v797_v12, 4  ;;  %v795_v42 = vrot.slane %v794_v31, 1 }
 0x16b   : > { %823 = vst.msk [vmem:[%s1230_s30] sm:$0x1] %vm822_vm5, %v817_v25  ;;  %v678_v43 = vrot.slane %v677_v13, 1 }
 0x16c   : > { %v799_v15 = vadd.f32 %v798_v21, %v797_v12  ;;  %v796_v41 = vadd.f32 %v795_v42, %v794_v31 }
 0x16d   : > { %v679_v49 = vadd.f32 %v678_v43, %v677_v13 }
 0x16e   : > { %v800_v48 = vrot.slane %v799_v15, 2 }
 0x16f   : > { %v698_v14 = vpop.xlane.xlu1 %697  ;;  %v651_v46 = vpop.xlane.xlu2 %650 }
 0x170   : > { %v811_v50 = vsel %vm807_vm3, %v698_v14, %v782_v45  ;;  %v704_v51 = vpop.xlane.xlu0 %703  ;;  %v680_v54 = vadd.f32 %v651_v46, %v649_v37  ;;  %v801_v5 = vadd.f32 %v800_v48, %v799_v15 }
 0x171   : > { %v818_v52 = vsel %vm806_vm4, %v665_v47, %v811_v50  ;;  %v813_v4 = vsel %vm807_vm3, %v704_v51, %v796_v41 }
 0x172   : > { %824 = vst.msk [vmem:[%s1230_s30 + $0x1] sm:$0x1] %vm822_vm5, %v818_v52  ;;  %v820_v8 = vsel %vm806_vm4, %v679_v49, %v813_v4  ;;  %v681_v59 = vrot.slane %v680_v54, 4  ;;  %v802_v23 = vrot.slane %v801_v5, 1 }
 0x173   : > { %826 = vst.msk [vmem:[%s1230_s30 + $0x3] sm:$0x1] %vm822_vm5, %v820_v8 }
 0x174   : > { %v682_v30 = vadd.f32 %v681_v59, %v680_v54  ;;  %v803_v11 = vadd.f32 %v802_v23, %v801_v5 }
 0x176   : > { %v683_v44 = vrot.slane %v682_v30, 2 }
 0x177   : > { %v701_v29 = vpop.xlane.xlu2 %700  ;;  %v707_v0 = vpop.xlane.xlu1 %706 }
 0x178   : > { %v684_v34 = vadd.f32 %v683_v44, %v682_v30  ;;  %v812_v61 = vsel %vm807_vm3, %v701_v29, %v789_v57  ;;  %v814_v56 = vsel %vm807_vm3, %v707_v0, %v803_v11 }
 0x179   : > { %v819_v62 = vsel %vm806_vm4, %v672_v19, %v812_v61 }
 0x17a   : > { %v685_v63 = vrot.slane %v684_v34, 1  ;;  %825 = vst.msk [vmem:[%s1230_s30 + $0x2] sm:$0x1] %vm822_vm5, %v819_v62 }
 0x17c   : > { %v686_v24 = vadd.f32 %v685_v63, %v684_v34 }
 0x17e   : > { %v821_v60 = vsel %vm806_vm4, %v686_v24, %v814_v56 }
 0x17f   : > { %827 = vst.msk [vmem:[%s1230_s30 + $0x4] sm:$0x1] %vm822_vm5, %v821_v60 }
 0x180 PF: > { %s13_s14 = sadd.s32 1, %s987_s14   ;;  %s1275_s12 = smov %s983_s13 }
 0x181   : > { %p10_p5 = scmp.ge.s32.totalorder %s13_s14, 4   ;;  %s1276_s13 = smov %s1278_s15 }
 0x183   :  { %12 = sbr.rel (!%p10_p5) target bundleno = 2 (0x2), region = 84 }

</bundles_post_ra>
